<compile_context>
chip_gen: v7x
topology: tpu7x:2x2x1
jax: 0.10.0
libtpu: 0.0.40
codegen_flags: <defaults>
</compile_context>

<pallas_src>
import functools

import numpy as np
import jax
import jax.numpy as jnp
from jax.experimental import pallas as pl
from jax.experimental.pallas import tpu as pltpu


def _level_params(H, W, l):
    """Kernel/stride/output sizes for SPP level l (matches the PyTorch code)."""
    kh = int(np.ceil(H / (l + 1)))
    kw = int(np.ceil(W / (l + 1)))
    sh = int(np.floor(H / (l + 1)))
    sw = int(np.floor(W / (l + 1)))
    # MaxPool2d output size (no padding, no dilation, floor mode):
    oh = (H - kh) // sh + 1
    ow = (W - kw) // sw + 1
    return kh, kw, sh, sw, oh, ow


def spp_kernel(x_ref, o_ref, wbuf_ref, *, params, nb):
    """Pools NB batch elements per grid step.

    x_ref:    (NB, H, W, C)  channel-last block (C on lanes, W on sublanes).
    o_ref:    (NB, B, C)     pooled bins in (level, i, j) row order, C last.
    wbuf_ref: (W, C)         VMEM scratch holding one H-folded row.
    """
    for b in range(nb):
        pos = 0
        for (kh, kw, sh, sw, oh, ow) in params:
            for i in range(oh):
                # H-pass: fold kh contiguous (W, C) rows read straight from
                # the Ref (VPU max only, channels dense on lanes; nothing
                # larger than a row tile is ever live in vregs).
                slab = x_ref[b, i * sh]
                for di in range(1, kh):
                    slab = jnp.maximum(slab, x_ref[b, i * sh + di])

                # W-pass: stash the folded row, then fold kw strided (ow, C)
                # views — one vectorized result per output row.
                wbuf_ref[...] = slab
                acc = wbuf_ref[pl.ds(0, ow, stride=sw), :]
                for dj in range(1, kw):
                    acc = jnp.maximum(
                        acc, wbuf_ref[pl.ds(dj, ow, stride=sw), :])

                # Lane-dense store at a static offset (no concat of (1, C)
                # rows, no sublane re-packing).
                o_ref[b, pos:pos + ow, :] = acc
                pos += ow


def _pick_batch_block(N, per_elem_bytes):
    """Batch elements per grid step, sized for every TPU generation."""
    # Double-buffered input + output per element must stay well under the
    # scoped-VMEM default of the smallest generation (v5e: 16 MiB) and leave
    # headroom on v7x (64 MiB physical VMEM per TensorCore).
    budget = 8 * 1024 * 1024
    cap = max(1, budget // max(1, 2 * per_elem_bytes))
    if N >= 2:
        # Keep >= 2 grid steps so both v7x TensorCores get work.
        cap = min(cap, N // 2)
    cap = max(1, min(cap, 8))  # bound kernel unrolling
    nb = 1
    for d in range(1, cap + 1):
        if N % d == 0:          # divisor -> no padded edge blocks
            nb = d
    return nb


def spatial_pyramid_pooling(x, levels, *, channels_last=False):
    """SPP forward.

    x: (N, C, H, W) if channels_last=False (PyTorch contract), else (N, H, W, C).
    Returns (N, sum_l C*oh_l*ow_l) in PyTorch `.view(N, -1)` + cat ordering.
    """
    if channels_last:
        N, H, W, C = x.shape
        x_hwc = x                      # no extra HBM round-trip
    else:
        N, C, H, W = x.shape
        # TODO(synk): prefer feeding NHWC (channels_last=True) from the
        # producer — this transpose is a full extra HBM read+write.
        x_hwc = jnp.transpose(x, (0, 2, 3, 1))

    if H < levels or W < levels:
        raise ValueError(
            f"levels={levels} requires H, W >= levels (got H={H}, W={W}); "
            "otherwise the stride floor(H/(l+1)) would be zero.")

    params = tuple(_level_params(H, W, l) for l in range(levels))
    bins_per_level = [oh * ow for (_, _, _, _, oh, ow) in params]
    B = sum(bins_per_level)

    itemsize = jnp.dtype(x.dtype).itemsize
    per_elem_bytes = (H * W * C + B * C) * itemsize
    NB = _pick_batch_block(N, per_elem_bytes)

    kernel = functools.partial(spp_kernel, params=params, nb=NB)
    cost = pl.CostEstimate(
        flops=levels * N * H * W * C,                       # VPU max ops (approx)
        transcendentals=0,
        bytes_accessed=(N * H * W * C + N * B * C) * itemsize)

    out_nbc = pl.pallas_call(
        kernel,
        out_shape=jax.ShapeDtypeStruct((N, B, C), x.dtype),
        grid=(pl.cdiv(N, NB),),
        in_specs=[pl.BlockSpec((NB, H, W, C), lambda n: (n, 0, 0, 0))],
        out_specs=pl.BlockSpec((NB, B, C), lambda n: (n, 0, 0)),
        scratch_shapes=[pltpu.VMEM((W, C), x.dtype)],
        compiler_params=pltpu.CompilerParams(
            dimension_semantics=("parallel",),
            vmem_limit_bytes=32 * 1024 * 1024),
        cost_estimate=cost,
    )(x_hwc)

    # Restore PyTorch semantics: each level is (N, C, oh, ow).view(N, -1), a
    # C-major flatten with bins row-major.  We stored bins channel-last, so
    # transpose each level's (tiny) slab and flatten, then concatenate levels.
    pieces = []
    off = 0
    for nb_bins in bins_per_level:
        blk = out_nbc[:, off:off + nb_bins, :]                  # (N, nb, C)
        pieces.append(jnp.transpose(blk, (0, 2, 1)).reshape(N, C * nb_bins))
        off += nb_bins
    return jnp.concatenate(pieces, axis=1)


def spp_reference(x_np, levels):
    """Pure numpy reference replicating the PyTorch forward semantics."""
    N, C, H, W = x_np.shape
    outs = []
    for l in range(levels):
        kh, kw, sh, sw, oh, ow = _level_params(H, W, l)
        pooled = np.empty((N, C, oh, ow), dtype=x_np.dtype)
        for i in range(oh):
            for j in range(ow):
                win = x_np[:, :, i * sh:i * sh + kh, j * sw:j * sw + kw]
                pooled[:, :, i, j] = win.max(axis=(2, 3))
        outs.append(pooled.reshape(N, -1))
    return np.concatenate(outs, axis=1)


if __name__ == "__main__":
    # SpatialPyramidPooling has no learned parameters; `levels` is the config.
    levels = 3
    key = jax.random.PRNGKey(0)
    x = jax.random.normal(key, (2, 4, 16, 16), dtype=jnp.float32)  # NCHW

    out = spatial_pyramid_pooling(x, levels)
    out = jax.block_until_ready(out)

    ref = spp_reference(np.asarray(x), levels)
    np.testing.assert_allclose(np.asarray(out), ref, rtol=1e-6, atol=1e-6)

    # NHWC fast path (no wrapper transpose) must agree exactly.
    out_nhwc = spatial_pyramid_pooling(
        jnp.transpose(x, (0, 2, 3, 1)), levels, channels_last=True)
    out_nhwc = jax.block_until_ready(out_nhwc)
    np.testing.assert_allclose(np.asarray(out_nhwc), ref, rtol=1e-6, atol=1e-6)

    print("KERNEL_OK")
</pallas_src>

<mosaic_0001>
module attributes {stable_mosaic.version = 11 : i64} {
  func.func @spp_kernel(%arg0: i32, %arg1: memref<1x16x16x4xf32, #tpu.memory_space<vmem>>, %arg2: memref<1x14x4xf32, #tpu.memory_space<vmem>>, %arg3: memref<16x4xf32, #tpu.memory_space<vmem>>) attributes {dimension_semantics = [#tpu.dimension_semantics<parallel>], iteration_bounds = array<i64: 2>, scalar_prefetch = 0 : i64, scratch_operands = 1 : i64, tpu.core_type = #tpu.core_type<tc>, window_params = [{transform_indices = @transform_0, window_bounds = array<i64: 1, 16, 16, 4>}, {transform_indices = @transform_1, window_bounds = array<i64: 1, 14, 4>}]} {
    %c0 = arith.constant 0 : index
    %c0_0 = arith.constant 0 : index
    %c0_1 = arith.constant 0 : index
    %c0_2 = arith.constant 0 : index
    %0 = vector.load %arg1[%c0, %c0_0, %c0_1, %c0_2] : memref<1x16x16x4xf32, #tpu.memory_space<vmem>>, vector<1x1x16x4xf32>
    %1 = vector.shape_cast %0 : vector<1x1x16x4xf32> to vector<16x4xf32>
    %c0_3 = arith.constant 0 : index
    %c1 = arith.constant 1 : index
    %c0_4 = arith.constant 0 : index
    %c0_5 = arith.constant 0 : index
    %2 = vector.load %arg1[%c0_3, %c1, %c0_4, %c0_5] : memref<1x16x16x4xf32, #tpu.memory_space<vmem>>, vector<1x1x16x4xf32>
    %3 = vector.shape_cast %2 : vector<1x1x16x4xf32> to vector<16x4xf32>
    %4 = arith.maximumf %1, %3 : vector<16x4xf32>
    %c0_6 = arith.constant 0 : index
    %c2 = arith.constant 2 : index
    %c0_7 = arith.constant 0 : index
    %c0_8 = arith.constant 0 : index
    %5 = vector.load %arg1[%c0_6, %c2, %c0_7, %c0_8] : memref<1x16x16x4xf32, #tpu.memory_space<vmem>>, vector<1x1x16x4xf32>
    %6 = vector.shape_cast %5 : vector<1x1x16x4xf32> to vector<16x4xf32>
    %7 = arith.maximumf %4, %6 : vector<16x4xf32>
    %c0_9 = arith.constant 0 : index
    %c3 = arith.constant 3 : index
    %c0_10 = arith.constant 0 : index
    %c0_11 = arith.constant 0 : index
    %8 = vector.load %arg1[%c0_9, %c3, %c0_10, %c0_11] : memref<1x16x16x4xf32, #tpu.memory_space<vmem>>, vector<1x1x16x4xf32>
    %9 = vector.shape_cast %8 : vector<1x1x16x4xf32> to vector<16x4xf32>
    %10 = arith.maximumf %7, %9 : vector<16x4xf32>
    %c0_12 = arith.constant 0 : index
    %c4 = arith.constant 4 : index
    %c0_13 = arith.constant 0 : index
    %c0_14 = arith.constant 0 : index
    %11 = vector.load %arg1[%c0_12, %c4, %c0_13, %c0_14] : memref<1x16x16x4xf32, #tpu.memory_space<vmem>>, vector<1x1x16x4xf32>
    %12 = vector.shape_cast %11 : vector<1x1x16x4xf32> to vector<16x4xf32>
    %13 = arith.maximumf %10, %12 : vector<16x4xf32>
    %c0_15 = arith.constant 0 : index
    %c5 = arith.constant 5 : index
    %c0_16 = arith.constant 0 : index
    %c0_17 = arith.constant 0 : index
    %14 = vector.load %arg1[%c0_15, %c5, %c0_16, %c0_17] : memref<1x16x16x4xf32, #tpu.memory_space<vmem>>, vector<1x1x16x4xf32>
    %15 = vector.shape_cast %14 : vector<1x1x16x4xf32> to vector<16x4xf32>
    %16 = arith.maximumf %13, %15 : vector<16x4xf32>
    %c0_18 = arith.constant 0 : index
    %c6 = arith.constant 6 : index
    %c0_19 = arith.constant 0 : index
    %c0_20 = arith.constant 0 : index
    %17 = vector.load %arg1[%c0_18, %c6, %c0_19, %c0_20] : memref<1x16x16x4xf32, #tpu.memory_space<vmem>>, vector<1x1x16x4xf32>
    %18 = vector.shape_cast %17 : vector<1x1x16x4xf32> to vector<16x4xf32>
    %19 = arith.maximumf %16, %18 : vector<16x4xf32>
    %c0_21 = arith.constant 0 : index
    %c7 = arith.constant 7 : index
    %c0_22 = arith.constant 0 : index
    %c0_23 = arith.constant 0 : index
    %20 = vector.load %arg1[%c0_21, %c7, %c0_22, %c0_23] : memref<1x16x16x4xf32, #tpu.memory_space<vmem>>, vector<1x1x16x4xf32>
    %21 = vector.shape_cast %20 : vector<1x1x16x4xf32> to vector<16x4xf32>
    %22 = arith.maximumf %19, %21 : vector<16x4xf32>
    %c0_24 = arith.constant 0 : index
    %c8 = arith.constant 8 : index
    %c0_25 = arith.constant 0 : index
    %c0_26 = arith.constant 0 : index
    %23 = vector.load %arg1[%c0_24, %c8, %c0_25, %c0_26] : memref<1x16x16x4xf32, #tpu.memory_space<vmem>>, vector<1x1x16x4xf32>
    %24 = vector.shape_cast %23 : vector<1x1x16x4xf32> to vector<16x4xf32>
    %25 = arith.maximumf %22, %24 : vector<16x4xf32>
    %c0_27 = arith.constant 0 : index
    %c9 = arith.constant 9 : index
    %c0_28 = arith.constant 0 : index
    %c0_29 = arith.constant 0 : index
    %26 = vector.load %arg1[%c0_27, %c9, %c0_28, %c0_29] : memref<1x16x16x4xf32, #tpu.memory_space<vmem>>, vector<1x1x16x4xf32>
    %27 = vector.shape_cast %26 : vector<1x1x16x4xf32> to vector<16x4xf32>
    %28 = arith.maximumf %25, %27 : vector<16x4xf32>
    %c0_30 = arith.constant 0 : index
    %c10 = arith.constant 10 : index
    %c0_31 = arith.constant 0 : index
    %c0_32 = arith.constant 0 : index
    %29 = vector.load %arg1[%c0_30, %c10, %c0_31, %c0_32] : memref<1x16x16x4xf32, #tpu.memory_space<vmem>>, vector<1x1x16x4xf32>
    %30 = vector.shape_cast %29 : vector<1x1x16x4xf32> to vector<16x4xf32>
    %31 = arith.maximumf %28, %30 : vector<16x4xf32>
    %c0_33 = arith.constant 0 : index
    %c11 = arith.constant 11 : index
    %c0_34 = arith.constant 0 : index
    %c0_35 = arith.constant 0 : index
    %32 = vector.load %arg1[%c0_33, %c11, %c0_34, %c0_35] : memref<1x16x16x4xf32, #tpu.memory_space<vmem>>, vector<1x1x16x4xf32>
    %33 = vector.shape_cast %32 : vector<1x1x16x4xf32> to vector<16x4xf32>
    %34 = arith.maximumf %31, %33 : vector<16x4xf32>
    %c0_36 = arith.constant 0 : index
    %c12 = arith.constant 12 : index
    %c0_37 = arith.constant 0 : index
    %c0_38 = arith.constant 0 : index
    %35 = vector.load %arg1[%c0_36, %c12, %c0_37, %c0_38] : memref<1x16x16x4xf32, #tpu.memory_space<vmem>>, vector<1x1x16x4xf32>
    %36 = vector.shape_cast %35 : vector<1x1x16x4xf32> to vector<16x4xf32>
    %37 = arith.maximumf %34, %36 : vector<16x4xf32>
    %c0_39 = arith.constant 0 : index
    %c13 = arith.constant 13 : index
    %c0_40 = arith.constant 0 : index
    %c0_41 = arith.constant 0 : index
    %38 = vector.load %arg1[%c0_39, %c13, %c0_40, %c0_41] : memref<1x16x16x4xf32, #tpu.memory_space<vmem>>, vector<1x1x16x4xf32>
    %39 = vector.shape_cast %38 : vector<1x1x16x4xf32> to vector<16x4xf32>
    %40 = arith.maximumf %37, %39 : vector<16x4xf32>
    %c0_42 = arith.constant 0 : index
    %c14 = arith.constant 14 : index
    %c0_43 = arith.constant 0 : index
    %c0_44 = arith.constant 0 : index
    %41 = vector.load %arg1[%c0_42, %c14, %c0_43, %c0_44] : memref<1x16x16x4xf32, #tpu.memory_space<vmem>>, vector<1x1x16x4xf32>
    %42 = vector.shape_cast %41 : vector<1x1x16x4xf32> to vector<16x4xf32>
    %43 = arith.maximumf %40, %42 : vector<16x4xf32>
    %c0_45 = arith.constant 0 : index
    %c15 = arith.constant 15 : index
    %c0_46 = arith.constant 0 : index
    %c0_47 = arith.constant 0 : index
    %44 = vector.load %arg1[%c0_45, %c15, %c0_46, %c0_47] : memref<1x16x16x4xf32, #tpu.memory_space<vmem>>, vector<1x1x16x4xf32>
    %45 = vector.shape_cast %44 : vector<1x1x16x4xf32> to vector<16x4xf32>
    %46 = arith.maximumf %43, %45 : vector<16x4xf32>
    %c0_48 = arith.constant 0 : index
    %c0_49 = arith.constant 0 : index
    %47 = vector.load %arg3[%c0_48, %c0_49] : memref<16x4xf32, #tpu.memory_space<vmem>>, vector<16x4xf32>
    tpu.vector_store %arg3[%c0_48, %c0_49], %46 {strides = array<i32>} : memref<16x4xf32, #tpu.memory_space<vmem>>, vector<16x4xf32>,
    %c0_50 = arith.constant 0 : index
    %c0_51 = arith.constant 0 : index
    %48 = tpu.strided_load %arg3[%c0_50, %c0_51] {strides = array<i32: 16, 1>} : memref<16x4xf32, #tpu.memory_space<vmem>>, vector<1x4xf32>
    %c1_52 = arith.constant 1 : index
    %c0_53 = arith.constant 0 : index
    %49 = tpu.strided_load %arg3[%c1_52, %c0_53] {strides = array<i32: 16, 1>} : memref<16x4xf32, #tpu.memory_space<vmem>>, vector<1x4xf32>
    %50 = arith.maximumf %48, %49 : vector<1x4xf32>
    %c2_54 = arith.constant 2 : index
    %c0_55 = arith.constant 0 : index
    %51 = tpu.strided_load %arg3[%c2_54, %c0_55] {strides = array<i32: 16, 1>} : memref<16x4xf32, #tpu.memory_space<vmem>>, vector<1x4xf32>
    %52 = arith.maximumf %50, %51 : vector<1x4xf32>
    %c3_56 = arith.constant 3 : index
    %c0_57 = arith.constant 0 : index
    %53 = tpu.strided_load %arg3[%c3_56, %c0_57] {strides = array<i32: 16, 1>} : memref<16x4xf32, #tpu.memory_space<vmem>>, vector<1x4xf32>
    %54 = arith.maximumf %52, %53 : vector<1x4xf32>
    %c4_58 = arith.constant 4 : index
    %c0_59 = arith.constant 0 : index
    %55 = tpu.strided_load %arg3[%c4_58, %c0_59] {strides = array<i32: 16, 1>} : memref<16x4xf32, #tpu.memory_space<vmem>>, vector<1x4xf32>
    %56 = arith.maximumf %54, %55 : vector<1x4xf32>
    %c5_60 = arith.constant 5 : index
    %c0_61 = arith.constant 0 : index
    %57 = tpu.strided_load %arg3[%c5_60, %c0_61] {strides = array<i32: 16, 1>} : memref<16x4xf32, #tpu.memory_space<vmem>>, vector<1x4xf32>
    %58 = arith.maximumf %56, %57 : vector<1x4xf32>
    %c6_62 = arith.constant 6 : index
    %c0_63 = arith.constant 0 : index
    %59 = tpu.strided_load %arg3[%c6_62, %c0_63] {strides = array<i32: 16, 1>} : memref<16x4xf32, #tpu.memory_space<vmem>>, vector<1x4xf32>
    %60 = arith.maximumf %58, %59 : vector<1x4xf32>
    %c7_64 = arith.constant 7 : index
    %c0_65 = arith.constant 0 : index
    %61 = tpu.strided_load %arg3[%c7_64, %c0_65] {strides = array<i32: 16, 1>} : memref<16x4xf32, #tpu.memory_space<vmem>>, vector<1x4xf32>
    %62 = arith.maximumf %60, %61 : vector<1x4xf32>
    %c8_66 = arith.constant 8 : index
    %c0_67 = arith.constant 0 : index
    %63 = tpu.strided_load %arg3[%c8_66, %c0_67] {strides = array<i32: 16, 1>} : memref<16x4xf32, #tpu.memory_space<vmem>>, vector<1x4xf32>
    %64 = arith.maximumf %62, %63 : vector<1x4xf32>
    %c9_68 = arith.constant 9 : index
    %c0_69 = arith.constant 0 : index
    %65 = tpu.strided_load %arg3[%c9_68, %c0_69] {strides = array<i32: 16, 1>} : memref<16x4xf32, #tpu.memory_space<vmem>>, vector<1x4xf32>
    %66 = arith.maximumf %64, %65 : vector<1x4xf32>
    %c10_70 = arith.constant 10 : index
    %c0_71 = arith.constant 0 : index
    %67 = tpu.strided_load %arg3[%c10_70, %c0_71] {strides = array<i32: 16, 1>} : memref<16x4xf32, #tpu.memory_space<vmem>>, vector<1x4xf32>
    %68 = arith.maximumf %66, %67 : vector<1x4xf32>
    %c11_72 = arith.constant 11 : index
    %c0_73 = arith.constant 0 : index
    %69 = tpu.strided_load %arg3[%c11_72, %c0_73] {strides = array<i32: 16, 1>} : memref<16x4xf32, #tpu.memory_space<vmem>>, vector<1x4xf32>
    %70 = arith.maximumf %68, %69 : vector<1x4xf32>
    %c12_74 = arith.constant 12 : index
    %c0_75 = arith.constant 0 : index
    %71 = tpu.strided_load %arg3[%c12_74, %c0_75] {strides = array<i32: 16, 1>} : memref<16x4xf32, #tpu.memory_space<vmem>>, vector<1x4xf32>
    %72 = arith.maximumf %70, %71 : vector<1x4xf32>
    %c13_76 = arith.constant 13 : index
    %c0_77 = arith.constant 0 : index
    %73 = tpu.strided_load %arg3[%c13_76, %c0_77] {strides = array<i32: 16, 1>} : memref<16x4xf32, #tpu.memory_space<vmem>>, vector<1x4xf32>
    %74 = arith.maximumf %72, %73 : vector<1x4xf32>
    %c14_78 = arith.constant 14 : index
    %c0_79 = arith.constant 0 : index
    %75 = tpu.strided_load %arg3[%c14_78, %c0_79] {strides = array<i32: 16, 1>} : memref<16x4xf32, #tpu.memory_space<vmem>>, vector<1x4xf32>
    %76 = arith.maximumf %74, %75 : vector<1x4xf32>
    %c15_80 = arith.constant 15 : index
    %c0_81 = arith.constant 0 : index
    %77 = tpu.strided_load %arg3[%c15_80, %c0_81] {strides = array<i32: 16, 1>} : memref<16x4xf32, #tpu.memory_space<vmem>>, vector<1x4xf32>
    %78 = arith.maximumf %76, %77 : vector<1x4xf32>
    %c0_82 = arith.constant 0 : index
    %c0_83 = arith.constant 0 : index
    %c0_84 = arith.constant 0 : index
    %79 = vector.load %arg2[%c0_82, %c0_83, %c0_84] : memref<1x14x4xf32, #tpu.memory_space<vmem>>, vector<1x1x4xf32>
    %80 = vector.shape_cast %79 : vector<1x1x4xf32> to vector<1x4xf32>
    %81 = vector.shape_cast %78 : vector<1x4xf32> to vector<1x1x4xf32>
    tpu.vector_store %arg2[%c0_82, %c0_83, %c0_84], %81 {strides = array<i32>} : memref<1x14x4xf32, #tpu.memory_space<vmem>>, vector<1x1x4xf32>,
    %c0_85 = arith.constant 0 : index
    %c0_86 = arith.constant 0 : index
    %c0_87 = arith.constant 0 : index
    %c0_88 = arith.constant 0 : index
    %82 = vector.load %arg1[%c0_85, %c0_86, %c0_87, %c0_88] : memref<1x16x16x4xf32, #tpu.memory_space<vmem>>, vector<1x1x16x4xf32>
    %83 = vector.shape_cast %82 : vector<1x1x16x4xf32> to vector<16x4xf32>
    %c0_89 = arith.constant 0 : index
    %c1_90 = arith.constant 1 : index
    %c0_91 = arith.constant 0 : index
    %c0_92 = arith.constant 0 : index
    %84 = vector.load %arg1[%c0_89, %c1_90, %c0_91, %c0_92] : memref<1x16x16x4xf32, #tpu.memory_space<vmem>>, vector<1x1x16x4xf32>
    %85 = vector.shape_cast %84 : vector<1x1x16x4xf32> to vector<16x4xf32>
    %86 = arith.maximumf %83, %85 : vector<16x4xf32>
    %c0_93 = arith.constant 0 : index
    %c2_94 = arith.constant 2 : index
    %c0_95 = arith.constant 0 : index
    %c0_96 = arith.constant 0 : index
    %87 = vector.load %arg1[%c0_93, %c2_94, %c0_95, %c0_96] : memref<1x16x16x4xf32, #tpu.memory_space<vmem>>, vector<1x1x16x4xf32>
    %88 = vector.shape_cast %87 : vector<1x1x16x4xf32> to vector<16x4xf32>
    %89 = arith.maximumf %86, %88 : vector<16x4xf32>
    %c0_97 = arith.constant 0 : index
    %c3_98 = arith.constant 3 : index
    %c0_99 = arith.constant 0 : index
    %c0_100 = arith.constant 0 : index
    %90 = vector.load %arg1[%c0_97, %c3_98, %c0_99, %c0_100] : memref<1x16x16x4xf32, #tpu.memory_space<vmem>>, vector<1x1x16x4xf32>
    %91 = vector.shape_cast %90 : vector<1x1x16x4xf32> to vector<16x4xf32>
    %92 = arith.maximumf %89, %91 : vector<16x4xf32>
    %c0_101 = arith.constant 0 : index
    %c4_102 = arith.constant 4 : index
    %c0_103 = arith.constant 0 : index
    %c0_104 = arith.constant 0 : index
    %93 = vector.load %arg1[%c0_101, %c4_102, %c0_103, %c0_104] : memref<1x16x16x4xf32, #tpu.memory_space<vmem>>, vector<1x1x16x4xf32>
    %94 = vector.shape_cast %93 : vector<1x1x16x4xf32> to vector<16x4xf32>
    %95 = arith.maximumf %92, %94 : vector<16x4xf32>
    %c0_105 = arith.constant 0 : index
    %c5_106 = arith.constant 5 : index
    %c0_107 = arith.constant 0 : index
    %c0_108 = arith.constant 0 : index
    %96 = vector.load %arg1[%c0_105, %c5_106, %c0_107, %c0_108] : memref<1x16x16x4xf32, #tpu.memory_space<vmem>>, vector<1x1x16x4xf32>
    %97 = vector.shape_cast %96 : vector<1x1x16x4xf32> to vector<16x4xf32>
    %98 = arith.maximumf %95, %97 : vector<16x4xf32>
    %c0_109 = arith.constant 0 : index
    %c6_110 = arith.constant 6 : index
    %c0_111 = arith.constant 0 : index
    %c0_112 = arith.constant 0 : index
    %99 = vector.load %arg1[%c0_109, %c6_110, %c0_111, %c0_112] : memref<1x16x16x4xf32, #tpu.memory_space<vmem>>, vector<1x1x16x4xf32>
    %100 = vector.shape_cast %99 : vector<1x1x16x4xf32> to vector<16x4xf32>
    %101 = arith.maximumf %98, %100 : vector<16x4xf32>
    %c0_113 = arith.constant 0 : index
    %c7_114 = arith.constant 7 : index
    %c0_115 = arith.constant 0 : index
    %c0_116 = arith.constant 0 : index
    %102 = vector.load %arg1[%c0_113, %c7_114, %c0_115, %c0_116] : memref<1x16x16x4xf32, #tpu.memory_space<vmem>>, vector<1x1x16x4xf32>
    %103 = vector.shape_cast %102 : vector<1x1x16x4xf32> to vector<16x4xf32>
    %104 = arith.maximumf %101, %103 : vector<16x4xf32>
    %c0_117 = arith.constant 0 : index
    %c0_118 = arith.constant 0 : index
    %105 = vector.load %arg3[%c0_117, %c0_118] : memref<16x4xf32, #tpu.memory_space<vmem>>, vector<16x4xf32>
    tpu.vector_store %arg3[%c0_117, %c0_118], %104 {strides = array<i32>} : memref<16x4xf32, #tpu.memory_space<vmem>>, vector<16x4xf32>,
    %c0_119 = arith.constant 0 : index
    %c0_120 = arith.constant 0 : index
    %106 = tpu.strided_load %arg3[%c0_119, %c0_120] {strides = array<i32: 8, 1>} : memref<16x4xf32, #tpu.memory_space<vmem>>, vector<2x4xf32>
    %c1_121 = arith.constant 1 : index
    %c0_122 = arith.constant 0 : index
    %107 = tpu.strided_load %arg3[%c1_121, %c0_122] {strides = array<i32: 8, 1>} : memref<16x4xf32, #tpu.memory_space<vmem>>, vector<2x4xf32>
    %108 = arith.maximumf %106, %107 : vector<2x4xf32>
    %c2_123 = arith.constant 2 : index
    %c0_124 = arith.constant 0 : index
    %109 = tpu.strided_load %arg3[%c2_123, %c0_124] {strides = array<i32: 8, 1>} : memref<16x4xf32, #tpu.memory_space<vmem>>, vector<2x4xf32>
    %110 = arith.maximumf %108, %109 : vector<2x4xf32>
    %c3_125 = arith.constant 3 : index
    %c0_126 = arith.constant 0 : index
    %111 = tpu.strided_load %arg3[%c3_125, %c0_126] {strides = array<i32: 8, 1>} : memref<16x4xf32, #tpu.memory_space<vmem>>, vector<2x4xf32>
    %112 = arith.maximumf %110, %111 : vector<2x4xf32>
    %c4_127 = arith.constant 4 : index
    %c0_128 = arith.constant 0 : index
    %113 = tpu.strided_load %arg3[%c4_127, %c0_128] {strides = array<i32: 8, 1>} : memref<16x4xf32, #tpu.memory_space<vmem>>, vector<2x4xf32>
    %114 = arith.maximumf %112, %113 : vector<2x4xf32>
    %c5_129 = arith.constant 5 : index
    %c0_130 = arith.constant 0 : index
    %115 = tpu.strided_load %arg3[%c5_129, %c0_130] {strides = array<i32: 8, 1>} : memref<16x4xf32, #tpu.memory_space<vmem>>, vector<2x4xf32>
    %116 = arith.maximumf %114, %115 : vector<2x4xf32>
    %c6_131 = arith.constant 6 : index
    %c0_132 = arith.constant 0 : index
    %117 = tpu.strided_load %arg3[%c6_131, %c0_132] {strides = array<i32: 8, 1>} : memref<16x4xf32, #tpu.memory_space<vmem>>, vector<2x4xf32>
    %118 = arith.maximumf %116, %117 : vector<2x4xf32>
    %c7_133 = arith.constant 7 : index
    %c0_134 = arith.constant 0 : index
    %119 = tpu.strided_load %arg3[%c7_133, %c0_134] {strides = array<i32: 8, 1>} : memref<16x4xf32, #tpu.memory_space<vmem>>, vector<2x4xf32>
    %120 = arith.maximumf %118, %119 : vector<2x4xf32>
    %c0_135 = arith.constant 0 : index
    %c1_136 = arith.constant 1 : index
    %c0_137 = arith.constant 0 : index
    %121 = vector.load %arg2[%c0_135, %c1_136, %c0_137] : memref<1x14x4xf32, #tpu.memory_space<vmem>>, vector<1x2x4xf32>
    %122 = vector.shape_cast %121 : vector<1x2x4xf32> to vector<2x4xf32>
    %123 = vector.shape_cast %120 : vector<2x4xf32> to vector<1x2x4xf32>
    tpu.vector_store %arg2[%c0_135, %c1_136, %c0_137], %123 {strides = array<i32>} : memref<1x14x4xf32, #tpu.memory_space<vmem>>, vector<1x2x4xf32>,
    %c0_138 = arith.constant 0 : index
    %c8_139 = arith.constant 8 : index
    %c0_140 = arith.constant 0 : index
    %c0_141 = arith.constant 0 : index
    %124 = vector.load %arg1[%c0_138, %c8_139, %c0_140, %c0_141] : memref<1x16x16x4xf32, #tpu.memory_space<vmem>>, vector<1x1x16x4xf32>
    %125 = vector.shape_cast %124 : vector<1x1x16x4xf32> to vector<16x4xf32>
    %c0_142 = arith.constant 0 : index
    %c9_143 = arith.constant 9 : index
    %c0_144 = arith.constant 0 : index
    %c0_145 = arith.constant 0 : index
    %126 = vector.load %arg1[%c0_142, %c9_143, %c0_144, %c0_145] : memref<1x16x16x4xf32, #tpu.memory_space<vmem>>, vector<1x1x16x4xf32>
    %127 = vector.shape_cast %126 : vector<1x1x16x4xf32> to vector<16x4xf32>
    %128 = arith.maximumf %125, %127 : vector<16x4xf32>
    %c0_146 = arith.constant 0 : index
    %c10_147 = arith.constant 10 : index
    %c0_148 = arith.constant 0 : index
    %c0_149 = arith.constant 0 : index
    %129 = vector.load %arg1[%c0_146, %c10_147, %c0_148, %c0_149] : memref<1x16x16x4xf32, #tpu.memory_space<vmem>>, vector<1x1x16x4xf32>
    %130 = vector.shape_cast %129 : vector<1x1x16x4xf32> to vector<16x4xf32>
    %131 = arith.maximumf %128, %130 : vector<16x4xf32>
    %c0_150 = arith.constant 0 : index
    %c11_151 = arith.constant 11 : index
    %c0_152 = arith.constant 0 : index
    %c0_153 = arith.constant 0 : index
    %132 = vector.load %arg1[%c0_150, %c11_151, %c0_152, %c0_153] : memref<1x16x16x4xf32, #tpu.memory_space<vmem>>, vector<1x1x16x4xf32>
    %133 = vector.shape_cast %132 : vector<1x1x16x4xf32> to vector<16x4xf32>
    %134 = arith.maximumf %131, %133 : vector<16x4xf32>
    %c0_154 = arith.constant 0 : index
    %c12_155 = arith.constant 12 : index
    %c0_156 = arith.constant 0 : index
    %c0_157 = arith.constant 0 : index
    %135 = vector.load %arg1[%c0_154, %c12_155, %c0_156, %c0_157] : memref<1x16x16x4xf32, #tpu.memory_space<vmem>>, vector<1x1x16x4xf32>
    %136 = vector.shape_cast %135 : vector<1x1x16x4xf32> to vector<16x4xf32>
    %137 = arith.maximumf %134, %136 : vector<16x4xf32>
    %c0_158 = arith.constant 0 : index
    %c13_159 = arith.constant 13 : index
    %c0_160 = arith.constant 0 : index
    %c0_161 = arith.constant 0 : index
    %138 = vector.load %arg1[%c0_158, %c13_159, %c0_160, %c0_161] : memref<1x16x16x4xf32, #tpu.memory_space<vmem>>, vector<1x1x16x4xf32>
    %139 = vector.shape_cast %138 : vector<1x1x16x4xf32> to vector<16x4xf32>
    %140 = arith.maximumf %137, %139 : vector<16x4xf32>
    %c0_162 = arith.constant 0 : index
    %c14_163 = arith.constant 14 : index
    %c0_164 = arith.constant 0 : index
    %c0_165 = arith.constant 0 : index
    %141 = vector.load %arg1[%c0_162, %c14_163, %c0_164, %c0_165] : memref<1x16x16x4xf32, #tpu.memory_space<vmem>>, vector<1x1x16x4xf32>
    %142 = vector.shape_cast %141 : vector<1x1x16x4xf32> to vector<16x4xf32>
    %143 = arith.maximumf %140, %142 : vector<16x4xf32>
    %c0_166 = arith.constant 0 : index
    %c15_167 = arith.constant 15 : index
    %c0_168 = arith.constant 0 : index
    %c0_169 = arith.constant 0 : index
    %144 = vector.load %arg1[%c0_166, %c15_167, %c0_168, %c0_169] : memref<1x16x16x4xf32, #tpu.memory_space<vmem>>, vector<1x1x16x4xf32>
    %145 = vector.shape_cast %144 : vector<1x1x16x4xf32> to vector<16x4xf32>
    %146 = arith.maximumf %143, %145 : vector<16x4xf32>
    %c0_170 = arith.constant 0 : index
    %c0_171 = arith.constant 0 : index
    %147 = vector.load %arg3[%c0_170, %c0_171] : memref<16x4xf32, #tpu.memory_space<vmem>>, vector<16x4xf32>
    tpu.vector_store %arg3[%c0_170, %c0_171], %146 {strides = array<i32>} : memref<16x4xf32, #tpu.memory_space<vmem>>, vector<16x4xf32>,
    %c0_172 = arith.constant 0 : index
    %c0_173 = arith.constant 0 : index
    %148 = tpu.strided_load %arg3[%c0_172, %c0_173] {strides = array<i32: 8, 1>} : memref<16x4xf32, #tpu.memory_space<vmem>>, vector<2x4xf32>
    %c1_174 = arith.constant 1 : index
    %c0_175 = arith.constant 0 : index
    %149 = tpu.strided_load %arg3[%c1_174, %c0_175] {strides = array<i32: 8, 1>} : memref<16x4xf32, #tpu.memory_space<vmem>>, vector<2x4xf32>
    %150 = arith.maximumf %148, %149 : vector<2x4xf32>
    %c2_176 = arith.constant 2 : index
    %c0_177 = arith.constant 0 : index
    %151 = tpu.strided_load %arg3[%c2_176, %c0_177] {strides = array<i32: 8, 1>} : memref<16x4xf32, #tpu.memory_space<vmem>>, vector<2x4xf32>
    %152 = arith.maximumf %150, %151 : vector<2x4xf32>
    %c3_178 = arith.constant 3 : index
    %c0_179 = arith.constant 0 : index
    %153 = tpu.strided_load %arg3[%c3_178, %c0_179] {strides = array<i32: 8, 1>} : memref<16x4xf32, #tpu.memory_space<vmem>>, vector<2x4xf32>
    %154 = arith.maximumf %152, %153 : vector<2x4xf32>
    %c4_180 = arith.constant 4 : index
    %c0_181 = arith.constant 0 : index
    %155 = tpu.strided_load %arg3[%c4_180, %c0_181] {strides = array<i32: 8, 1>} : memref<16x4xf32, #tpu.memory_space<vmem>>, vector<2x4xf32>
    %156 = arith.maximumf %154, %155 : vector<2x4xf32>
    %c5_182 = arith.constant 5 : index
    %c0_183 = arith.constant 0 : index
    %157 = tpu.strided_load %arg3[%c5_182, %c0_183] {strides = array<i32: 8, 1>} : memref<16x4xf32, #tpu.memory_space<vmem>>, vector<2x4xf32>
    %158 = arith.maximumf %156, %157 : vector<2x4xf32>
    %c6_184 = arith.constant 6 : index
    %c0_185 = arith.constant 0 : index
    %159 = tpu.strided_load %arg3[%c6_184, %c0_185] {strides = array<i32: 8, 1>} : memref<16x4xf32, #tpu.memory_space<vmem>>, vector<2x4xf32>
    %160 = arith.maximumf %158, %159 : vector<2x4xf32>
    %c7_186 = arith.constant 7 : index
    %c0_187 = arith.constant 0 : index
    %161 = tpu.strided_load %arg3[%c7_186, %c0_187] {strides = array<i32: 8, 1>} : memref<16x4xf32, #tpu.memory_space<vmem>>, vector<2x4xf32>
    %162 = arith.maximumf %160, %161 : vector<2x4xf32>
    %c0_188 = arith.constant 0 : index
    %c3_189 = arith.constant 3 : index
    %c0_190 = arith.constant 0 : index
    %163 = vector.load %arg2[%c0_188, %c3_189, %c0_190] : memref<1x14x4xf32, #tpu.memory_space<vmem>>, vector<1x2x4xf32>
    %164 = vector.shape_cast %163 : vector<1x2x4xf32> to vector<2x4xf32>
    %165 = vector.shape_cast %162 : vector<2x4xf32> to vector<1x2x4xf32>
    tpu.vector_store %arg2[%c0_188, %c3_189, %c0_190], %165 {strides = array<i32>} : memref<1x14x4xf32, #tpu.memory_space<vmem>>, vector<1x2x4xf32>,
    %c0_191 = arith.constant 0 : index
    %c0_192 = arith.constant 0 : index
    %c0_193 = arith.constant 0 : index
    %c0_194 = arith.constant 0 : index
    %166 = vector.load %arg1[%c0_191, %c0_192, %c0_193, %c0_194] : memref<1x16x16x4xf32, #tpu.memory_space<vmem>>, vector<1x1x16x4xf32>
    %167 = vector.shape_cast %166 : vector<1x1x16x4xf32> to vector<16x4xf32>
    %c0_195 = arith.constant 0 : index
    %c1_196 = arith.constant 1 : index
    %c0_197 = arith.constant 0 : index
    %c0_198 = arith.constant 0 : index
    %168 = vector.load %arg1[%c0_195, %c1_196, %c0_197, %c0_198] : memref<1x16x16x4xf32, #tpu.memory_space<vmem>>, vector<1x1x16x4xf32>
    %169 = vector.shape_cast %168 : vector<1x1x16x4xf32> to vector<16x4xf32>
    %170 = arith.maximumf %167, %169 : vector<16x4xf32>
    %c0_199 = arith.constant 0 : index
    %c2_200 = arith.constant 2 : index
    %c0_201 = arith.constant 0 : index
    %c0_202 = arith.constant 0 : index
    %171 = vector.load %arg1[%c0_199, %c2_200, %c0_201, %c0_202] : memref<1x16x16x4xf32, #tpu.memory_space<vmem>>, vector<1x1x16x4xf32>
    %172 = vector.shape_cast %171 : vector<1x1x16x4xf32> to vector<16x4xf32>
    %173 = arith.maximumf %170, %172 : vector<16x4xf32>
    %c0_203 = arith.constant 0 : index
    %c3_204 = arith.constant 3 : index
    %c0_205 = arith.constant 0 : index
    %c0_206 = arith.constant 0 : index
    %174 = vector.load %arg1[%c0_203, %c3_204, %c0_205, %c0_206] : memref<1x16x16x4xf32, #tpu.memory_space<vmem>>, vector<1x1x16x4xf32>
    %175 = vector.shape_cast %174 : vector<1x1x16x4xf32> to vector<16x4xf32>
    %176 = arith.maximumf %173, %175 : vector<16x4xf32>
    %c0_207 = arith.constant 0 : index
    %c4_208 = arith.constant 4 : index
    %c0_209 = arith.constant 0 : index
    %c0_210 = arith.constant 0 : index
    %177 = vector.load %arg1[%c0_207, %c4_208, %c0_209, %c0_210] : memref<1x16x16x4xf32, #tpu.memory_space<vmem>>, vector<1x1x16x4xf32>
    %178 = vector.shape_cast %177 : vector<1x1x16x4xf32> to vector<16x4xf32>
    %179 = arith.maximumf %176, %178 : vector<16x4xf32>
    %c0_211 = arith.constant 0 : index
    %c5_212 = arith.constant 5 : index
    %c0_213 = arith.constant 0 : index
    %c0_214 = arith.constant 0 : index
    %180 = vector.load %arg1[%c0_211, %c5_212, %c0_213, %c0_214] : memref<1x16x16x4xf32, #tpu.memory_space<vmem>>, vector<1x1x16x4xf32>
    %181 = vector.shape_cast %180 : vector<1x1x16x4xf32> to vector<16x4xf32>
    %182 = arith.maximumf %179, %181 : vector<16x4xf32>
    %c0_215 = arith.constant 0 : index
    %c0_216 = arith.constant 0 : index
    %183 = vector.load %arg3[%c0_215, %c0_216] : memref<16x4xf32, #tpu.memory_space<vmem>>, vector<16x4xf32>
    tpu.vector_store %arg3[%c0_215, %c0_216], %182 {strides = array<i32>} : memref<16x4xf32, #tpu.memory_space<vmem>>, vector<16x4xf32>,
    %c0_217 = arith.constant 0 : index
    %c0_218 = arith.constant 0 : index
    %184 = tpu.strided_load %arg3[%c0_217, %c0_218] {strides = array<i32: 5, 1>} : memref<16x4xf32, #tpu.memory_space<vmem>>, vector<3x4xf32>
    %c1_219 = arith.constant 1 : index
    %c0_220 = arith.constant 0 : index
    %185 = tpu.strided_load %arg3[%c1_219, %c0_220] {strides = array<i32: 5, 1>} : memref<16x4xf32, #tpu.memory_space<vmem>>, vector<3x4xf32>
    %186 = arith.maximumf %184, %185 : vector<3x4xf32>
    %c2_221 = arith.constant 2 : index
    %c0_222 = arith.constant 0 : index
    %187 = tpu.strided_load %arg3[%c2_221, %c0_222] {strides = array<i32: 5, 1>} : memref<16x4xf32, #tpu.memory_space<vmem>>, vector<3x4xf32>
    %188 = arith.maximumf %186, %187 : vector<3x4xf32>
    %c3_223 = arith.constant 3 : index
    %c0_224 = arith.constant 0 : index
    %189 = tpu.strided_load %arg3[%c3_223, %c0_224] {strides = array<i32: 5, 1>} : memref<16x4xf32, #tpu.memory_space<vmem>>, vector<3x4xf32>
    %190 = arith.maximumf %188, %189 : vector<3x4xf32>
    %c4_225 = arith.constant 4 : index
    %c0_226 = arith.constant 0 : index
    %191 = tpu.strided_load %arg3[%c4_225, %c0_226] {strides = array<i32: 5, 1>} : memref<16x4xf32, #tpu.memory_space<vmem>>, vector<3x4xf32>
    %192 = arith.maximumf %190, %191 : vector<3x4xf32>
    %c5_227 = arith.constant 5 : index
    %c0_228 = arith.constant 0 : index
    %193 = tpu.strided_load %arg3[%c5_227, %c0_228] {strides = array<i32: 5, 1>} : memref<16x4xf32, #tpu.memory_space<vmem>>, vector<3x4xf32>
    %194 = arith.maximumf %192, %193 : vector<3x4xf32>
    %c0_229 = arith.constant 0 : index
    %c5_230 = arith.constant 5 : index
    %c0_231 = arith.constant 0 : index
    %195 = vector.load %arg2[%c0_229, %c5_230, %c0_231] : memref<1x14x4xf32, #tpu.memory_space<vmem>>, vector<1x3x4xf32>
    %196 = vector.shape_cast %195 : vector<1x3x4xf32> to vector<3x4xf32>
    %197 = vector.shape_cast %194 : vector<3x4xf32> to vector<1x3x4xf32>
    tpu.vector_store %arg2[%c0_229, %c5_230, %c0_231], %197 {strides = array<i32>} : memref<1x14x4xf32, #tpu.memory_space<vmem>>, vector<1x3x4xf32>,
    %c0_232 = arith.constant 0 : index
    %c5_233 = arith.constant 5 : index
    %c0_234 = arith.constant 0 : index
    %c0_235 = arith.constant 0 : index
    %198 = vector.load %arg1[%c0_232, %c5_233, %c0_234, %c0_235] : memref<1x16x16x4xf32, #tpu.memory_space<vmem>>, vector<1x1x16x4xf32>
    %199 = vector.shape_cast %198 : vector<1x1x16x4xf32> to vector<16x4xf32>
    %c0_236 = arith.constant 0 : index
    %c6_237 = arith.constant 6 : index
    %c0_238 = arith.constant 0 : index
    %c0_239 = arith.constant 0 : index
    %200 = vector.load %arg1[%c0_236, %c6_237, %c0_238, %c0_239] : memref<1x16x16x4xf32, #tpu.memory_space<vmem>>, vector<1x1x16x4xf32>
    %201 = vector.shape_cast %200 : vector<1x1x16x4xf32> to vector<16x4xf32>
    %202 = arith.maximumf %199, %201 : vector<16x4xf32>
    %c0_240 = arith.constant 0 : index
    %c7_241 = arith.constant 7 : index
    %c0_242 = arith.constant 0 : index
    %c0_243 = arith.constant 0 : index
    %203 = vector.load %arg1[%c0_240, %c7_241, %c0_242, %c0_243] : memref<1x16x16x4xf32, #tpu.memory_space<vmem>>, vector<1x1x16x4xf32>
    %204 = vector.shape_cast %203 : vector<1x1x16x4xf32> to vector<16x4xf32>
    %205 = arith.maximumf %202, %204 : vector<16x4xf32>
    %c0_244 = arith.constant 0 : index
    %c8_245 = arith.constant 8 : index
    %c0_246 = arith.constant 0 : index
    %c0_247 = arith.constant 0 : index
    %206 = vector.load %arg1[%c0_244, %c8_245, %c0_246, %c0_247] : memref<1x16x16x4xf32, #tpu.memory_space<vmem>>, vector<1x1x16x4xf32>
    %207 = vector.shape_cast %206 : vector<1x1x16x4xf32> to vector<16x4xf32>
    %208 = arith.maximumf %205, %207 : vector<16x4xf32>
    %c0_248 = arith.constant 0 : index
    %c9_249 = arith.constant 9 : index
    %c0_250 = arith.constant 0 : index
    %c0_251 = arith.constant 0 : index
    %209 = vector.load %arg1[%c0_248, %c9_249, %c0_250, %c0_251] : memref<1x16x16x4xf32, #tpu.memory_space<vmem>>, vector<1x1x16x4xf32>
    %210 = vector.shape_cast %209 : vector<1x1x16x4xf32> to vector<16x4xf32>
    %211 = arith.maximumf %208, %210 : vector<16x4xf32>
    %c0_252 = arith.constant 0 : index
    %c10_253 = arith.constant 10 : index
    %c0_254 = arith.constant 0 : index
    %c0_255 = arith.constant 0 : index
    %212 = vector.load %arg1[%c0_252, %c10_253, %c0_254, %c0_255] : memref<1x16x16x4xf32, #tpu.memory_space<vmem>>, vector<1x1x16x4xf32>
    %213 = vector.shape_cast %212 : vector<1x1x16x4xf32> to vector<16x4xf32>
    %214 = arith.maximumf %211, %213 : vector<16x4xf32>
    %c0_256 = arith.constant 0 : index
    %c0_257 = arith.constant 0 : index
    %215 = vector.load %arg3[%c0_256, %c0_257] : memref<16x4xf32, #tpu.memory_space<vmem>>, vector<16x4xf32>
    tpu.vector_store %arg3[%c0_256, %c0_257], %214 {strides = array<i32>} : memref<16x4xf32, #tpu.memory_space<vmem>>, vector<16x4xf32>,
    %c0_258 = arith.constant 0 : index
    %c0_259 = arith.constant 0 : index
    %216 = tpu.strided_load %arg3[%c0_258, %c0_259] {strides = array<i32: 5, 1>} : memref<16x4xf32, #tpu.memory_space<vmem>>, vector<3x4xf32>
    %c1_260 = arith.constant 1 : index
    %c0_261 = arith.constant 0 : index
    %217 = tpu.strided_load %arg3[%c1_260, %c0_261] {strides = array<i32: 5, 1>} : memref<16x4xf32, #tpu.memory_space<vmem>>, vector<3x4xf32>
    %218 = arith.maximumf %216, %217 : vector<3x4xf32>
    %c2_262 = arith.constant 2 : index
    %c0_263 = arith.constant 0 : index
    %219 = tpu.strided_load %arg3[%c2_262, %c0_263] {strides = array<i32: 5, 1>} : memref<16x4xf32, #tpu.memory_space<vmem>>, vector<3x4xf32>
    %220 = arith.maximumf %218, %219 : vector<3x4xf32>
    %c3_264 = arith.constant 3 : index
    %c0_265 = arith.constant 0 : index
    %221 = tpu.strided_load %arg3[%c3_264, %c0_265] {strides = array<i32: 5, 1>} : memref<16x4xf32, #tpu.memory_space<vmem>>, vector<3x4xf32>
    %222 = arith.maximumf %220, %221 : vector<3x4xf32>
    %c4_266 = arith.constant 4 : index
    %c0_267 = arith.constant 0 : index
    %223 = tpu.strided_load %arg3[%c4_266, %c0_267] {strides = array<i32: 5, 1>} : memref<16x4xf32, #tpu.memory_space<vmem>>, vector<3x4xf32>
    %224 = arith.maximumf %222, %223 : vector<3x4xf32>
    %c5_268 = arith.constant 5 : index
    %c0_269 = arith.constant 0 : index
    %225 = tpu.strided_load %arg3[%c5_268, %c0_269] {strides = array<i32: 5, 1>} : memref<16x4xf32, #tpu.memory_space<vmem>>, vector<3x4xf32>
    %226 = arith.maximumf %224, %225 : vector<3x4xf32>
    %c0_270 = arith.constant 0 : index
    %c8_271 = arith.constant 8 : index
    %c0_272 = arith.constant 0 : index
    %227 = vector.load %arg2[%c0_270, %c8_271, %c0_272] : memref<1x14x4xf32, #tpu.memory_space<vmem>>, vector<1x3x4xf32>
    %228 = vector.shape_cast %227 : vector<1x3x4xf32> to vector<3x4xf32>
    %229 = vector.shape_cast %226 : vector<3x4xf32> to vector<1x3x4xf32>
    tpu.vector_store %arg2[%c0_270, %c8_271, %c0_272], %229 {strides = array<i32>} : memref<1x14x4xf32, #tpu.memory_space<vmem>>, vector<1x3x4xf32>,
    %c0_273 = arith.constant 0 : index
    %c10_274 = arith.constant 10 : index
    %c0_275 = arith.constant 0 : index
    %c0_276 = arith.constant 0 : index
    %230 = vector.load %arg1[%c0_273, %c10_274, %c0_275, %c0_276] : memref<1x16x16x4xf32, #tpu.memory_space<vmem>>, vector<1x1x16x4xf32>
    %231 = vector.shape_cast %230 : vector<1x1x16x4xf32> to vector<16x4xf32>
    %c0_277 = arith.constant 0 : index
    %c11_278 = arith.constant 11 : index
    %c0_279 = arith.constant 0 : index
    %c0_280 = arith.constant 0 : index
    %232 = vector.load %arg1[%c0_277, %c11_278, %c0_279, %c0_280] : memref<1x16x16x4xf32, #tpu.memory_space<vmem>>, vector<1x1x16x4xf32>
    %233 = vector.shape_cast %232 : vector<1x1x16x4xf32> to vector<16x4xf32>
    %234 = arith.maximumf %231, %233 : vector<16x4xf32>
    %c0_281 = arith.constant 0 : index
    %c12_282 = arith.constant 12 : index
    %c0_283 = arith.constant 0 : index
    %c0_284 = arith.constant 0 : index
    %235 = vector.load %arg1[%c0_281, %c12_282, %c0_283, %c0_284] : memref<1x16x16x4xf32, #tpu.memory_space<vmem>>, vector<1x1x16x4xf32>
    %236 = vector.shape_cast %235 : vector<1x1x16x4xf32> to vector<16x4xf32>
    %237 = arith.maximumf %234, %236 : vector<16x4xf32>
    %c0_285 = arith.constant 0 : index
    %c13_286 = arith.constant 13 : index
    %c0_287 = arith.constant 0 : index
    %c0_288 = arith.constant 0 : index
    %238 = vector.load %arg1[%c0_285, %c13_286, %c0_287, %c0_288] : memref<1x16x16x4xf32, #tpu.memory_space<vmem>>, vector<1x1x16x4xf32>
    %239 = vector.shape_cast %238 : vector<1x1x16x4xf32> to vector<16x4xf32>
    %240 = arith.maximumf %237, %239 : vector<16x4xf32>
    %c0_289 = arith.constant 0 : index
    %c14_290 = arith.constant 14 : index
    %c0_291 = arith.constant 0 : index
    %c0_292 = arith.constant 0 : index
    %241 = vector.load %arg1[%c0_289, %c14_290, %c0_291, %c0_292] : memref<1x16x16x4xf32, #tpu.memory_space<vmem>>, vector<1x1x16x4xf32>
    %242 = vector.shape_cast %241 : vector<1x1x16x4xf32> to vector<16x4xf32>
    %243 = arith.maximumf %240, %242 : vector<16x4xf32>
    %c0_293 = arith.constant 0 : index
    %c15_294 = arith.constant 15 : index
    %c0_295 = arith.constant 0 : index
    %c0_296 = arith.constant 0 : index
    %244 = vector.load %arg1[%c0_293, %c15_294, %c0_295, %c0_296] : memref<1x16x16x4xf32, #tpu.memory_space<vmem>>, vector<1x1x16x4xf32>
    %245 = vector.shape_cast %244 : vector<1x1x16x4xf32> to vector<16x4xf32>
    %246 = arith.maximumf %243, %245 : vector<16x4xf32>
    %c0_297 = arith.constant 0 : index
    %c0_298 = arith.constant 0 : index
    %247 = vector.load %arg3[%c0_297, %c0_298] : memref<16x4xf32, #tpu.memory_space<vmem>>, vector<16x4xf32>
    tpu.vector_store %arg3[%c0_297, %c0_298], %246 {strides = array<i32>} : memref<16x4xf32, #tpu.memory_space<vmem>>, vector<16x4xf32>,
    %c0_299 = arith.constant 0 : index
    %c0_300 = arith.constant 0 : index
    %248 = tpu.strided_load %arg3[%c0_299, %c0_300] {strides = array<i32: 5, 1>} : memref<16x4xf32, #tpu.memory_space<vmem>>, vector<3x4xf32>
    %c1_301 = arith.constant 1 : index
    %c0_302 = arith.constant 0 : index
    %249 = tpu.strided_load %arg3[%c1_301, %c0_302] {strides = array<i32: 5, 1>} : memref<16x4xf32, #tpu.memory_space<vmem>>, vector<3x4xf32>
    %250 = arith.maximumf %248, %249 : vector<3x4xf32>
    %c2_303 = arith.constant 2 : index
    %c0_304 = arith.constant 0 : index
    %251 = tpu.strided_load %arg3[%c2_303, %c0_304] {strides = array<i32: 5, 1>} : memref<16x4xf32, #tpu.memory_space<vmem>>, vector<3x4xf32>
    %252 = arith.maximumf %250, %251 : vector<3x4xf32>
    %c3_305 = arith.constant 3 : index
    %c0_306 = arith.constant 0 : index
    %253 = tpu.strided_load %arg3[%c3_305, %c0_306] {strides = array<i32: 5, 1>} : memref<16x4xf32, #tpu.memory_space<vmem>>, vector<3x4xf32>
    %254 = arith.maximumf %252, %253 : vector<3x4xf32>
    %c4_307 = arith.constant 4 : index
    %c0_308 = arith.constant 0 : index
    %255 = tpu.strided_load %arg3[%c4_307, %c0_308] {strides = array<i32: 5, 1>} : memref<16x4xf32, #tpu.memory_space<vmem>>, vector<3x4xf32>
    %256 = arith.maximumf %254, %255 : vector<3x4xf32>
    %c5_309 = arith.constant 5 : index
    %c0_310 = arith.constant 0 : index
    %257 = tpu.strided_load %arg3[%c5_309, %c0_310] {strides = array<i32: 5, 1>} : memref<16x4xf32, #tpu.memory_space<vmem>>, vector<3x4xf32>
    %258 = arith.maximumf %256, %257 : vector<3x4xf32>
    %c0_311 = arith.constant 0 : index
    %c11_312 = arith.constant 11 : index
    %c0_313 = arith.constant 0 : index
    %259 = vector.load %arg2[%c0_311, %c11_312, %c0_313] : memref<1x14x4xf32, #tpu.memory_space<vmem>>, vector<1x3x4xf32>
    %260 = vector.shape_cast %259 : vector<1x3x4xf32> to vector<3x4xf32>
    %261 = vector.shape_cast %258 : vector<3x4xf32> to vector<1x3x4xf32>
    tpu.vector_store %arg2[%c0_311, %c11_312, %c0_313], %261 {strides = array<i32>} : memref<1x14x4xf32, #tpu.memory_space<vmem>>, vector<1x3x4xf32>,
    return
  }
  func.func @transform_0(%arg0: i32) -> (i32, i32, i32, i32) {
    %c0_i32 = arith.constant 0 : i32
    %c0_i32_0 = arith.constant 0 : i32
    %c0_i32_1 = arith.constant 0 : i32
    %c0_i32_2 = arith.constant 0 : i32
    return %arg0, %c0_i32, %c0_i32_0, %c0_i32_1 : i32, i32, i32, i32
  }
  func.func @transform_1(%arg0: i32) -> (i32, i32, i32) {
    %c0_i32 = arith.constant 0 : i32
    %c0_i32_0 = arith.constant 0 : i32
    %c0_i32_1 = arith.constant 0 : i32
    return %arg0, %c0_i32, %c0_i32_0 : i32, i32, i32
  }
}

</mosaic_0001>

<bundles_post_ra>
// kernel: tpu_custom_call.1
= control target key start
LH: loop header
LB: loop body
LE: loop exit
PB: predicated region body
PF: predicated region fallthrough
CT: control target
= control target key end

     0   :  { %s639_s6 = smov 0   ;;  %s833_s0 = inlined_call_operand.vmem [shape: f32[2,16,16,4], index: 0, kind: input, shape index: {}]   ;;  %s834_s1 = inlined_call_operand.vmem [shape: f32[2,14,4], index: 1, kind: output, shape index: {}]  }
   0x1 LB: > { %s506_s7 = sadd.s32 4294967295, %s627_s6   ;;  %p510_p0 = scmp.ge.s32.totalorder %s627_s6, 1  ;;  %s627_s6 = sphi %s639_s6, %s11_s6  }
   0x2   : > { %p87_p1 = scmp.lt.s32.totalorder %s627_s6, 3 }
   0x4   : > { %p88_p2 = pnand %p510_p0, %p87_p1 }
   0x5   : > { %p107_p3 = scmp.lt.s32.totalorder (!%p88_p2), %s506_s7, 1  ;;  %vm194_vm0 = vcmask (!%p88_p2), 31744   ;;  %vm292_vm1 = vcmask (!%p88_p2), 25600   ;;  %vm243_vm2 = vcmask (!%p88_p2), 24576   ;;  %vm377_vm3 = vcmask (!%p88_p2), 26624  }
   0x6   : > { %91 = sbr.rel (%p88_p2) target bundleno = 126 (0x7e), region = 24 }
   0xd   : > { %s836_s7 = smov (!%p107_p3, %s506_s7), 1 }
   0xe   : > { %s611_s8 = sshll.u32 %s836_s7, 8  ;;  %s612_s12 = sshll.u32 %s836_s7, 4 }
   0xf   : > { %s653_s11 = scalar_lea.vmem %s833_s0, %s611_s8  ;;  %s791_s15 = scalar_lea.vmem %s834_s1, %s612_s12 }
  0x10   : > { %v117_v0 = vld [vmem:[%s653_s11] sm:$0xff]  ;;  %v515_v1 = vld [vmem:[%s653_s11 + $0x10] sm:$0xff]  ;;  %v118_v8 = vld [vmem:[%s653_s11 + $0x8] sm:$0xff] }
  0x11   : > { %v517_v2 = vld [vmem:[%s653_s11 + $0x20] sm:$0xff]  ;;  %v122_v3 = vmax.f32 %v117_v0, %v515_v1  ;;  %v519_v4 = vld [vmem:[%s653_s11 + $0x30] sm:$0xff]  ;;  %v516_v9 = vld [vmem:[%s653_s11 + $0x18] sm:$0xff] }
  0x12   : > { %v521_v6 = vld [vmem:[%s653_s11 + $0x40] sm:$0xff]  ;;  %v663_v10 = vld [vmem:[%s653_s11 + $0x50] sm:$0xff]  ;;  %v123_v11 = vmax.f32 %v118_v8, %v516_v9  ;;  %v518_v12 = vld [vmem:[%s653_s11 + $0x28] sm:$0xff] }
  0x13   : > { %v127_v5 = vmax.f32 %v122_v3, %v517_v2  ;;  %v520_v14 = vld [vmem:[%s653_s11 + $0x38] sm:$0xff]  ;;  %v668_v15 = vld [vmem:[%s653_s11 + $0x60] sm:$0xff]  ;;  %v522_v18 = vld [vmem:[%s653_s11 + $0x48] sm:$0xff] }
  0x14   : > { %v128_v16 = vmax.f32 %v123_v11, %v518_v12  ;;  %v675_v19 = vld [vmem:[%s653_s11 + $0x70] sm:$0xff]  ;;  %v680_v22 = vld [vmem:[%s653_s11 + $0x58] sm:$0xff]  ;;  %v683_v23 = vld [vmem:[%s653_s11 + $0x80] sm:$0xff] }
  0x15   : > { %v132_v7 = vmax.f32 %v127_v5, %v519_v4  ;;  %v687_v26 = vld [vmem:[%s653_s11 + $0x68] sm:$0xff]  ;;  %v690_v27 = vld [vmem:[%s653_s11 + $0x90] sm:$0xff]  ;;  %v697_v30 = vld [vmem:[%s653_s11 + $0x78] sm:$0xff] }
  0x16   : > { %v133_v20 = vmax.f32 %v128_v16, %v520_v14  ;;  %v700_v31 = vld [vmem:[%s653_s11 + $0xa0] sm:$0xff]  ;;  %v706_v34 = vld [vmem:[%s653_s11 + $0x88] sm:$0xff]  ;;  %v709_v35 = vld [vmem:[%s653_s11 + $0xb0] sm:$0xff]  ;;  %v298_v59 = vmax.f32 %v683_v23, %v690_v27 }
  0x17   : > { %v137_v13 = vmax.f32 %v132_v7, %v521_v6  ;;  %v714_v38 = vld [vmem:[%s653_s11 + $0x98] sm:$0xff]  ;;  %v717_v39 = vld [vmem:[%s653_s11 + $0xc0] sm:$0xff]  ;;  %v722_v42 = vld [vmem:[%s653_s11 + $0xa8] sm:$0xff] }
  0x18   : > { %v138_v24 = vmax.f32 %v133_v20, %v522_v18  ;;  %v725_v43 = vld [vmem:[%s653_s11 + $0xd0] sm:$0xff]  ;;  %v730_v46 = vld [vmem:[%s653_s11 + $0xb8] sm:$0xff]  ;;  %v733_v47 = vld [vmem:[%s653_s11 + $0xe0] sm:$0xff]  ;;  %v299_v60 = vmax.f32 %v706_v34, %v714_v38  ;;  %v302_v0 = vmax.f32 %v298_v59, %v700_v31 }
  0x19   : > { %v671_v17 = vmax.f32 %v137_v13, %v663_v10  ;;  %v738_v50 = vld [vmem:[%s653_s11 + $0xc8] sm:$0xff]  ;;  %v741_v51 = vld [vmem:[%s653_s11 + $0xf0] sm:$0xff]  ;;  %v746_v54 = vld [vmem:[%s653_s11 + $0xd8] sm:$0xff] }
  0x1a   : > { %v693_v28 = vmax.f32 %v138_v24, %v680_v22  ;;  %v751_v57 = vld [vmem:[%s653_s11 + $0xe8] sm:$0xff]  ;;  %v760_v61 = vld [vmem:[%s653_s11 + $0xf8] sm:$0xff]  ;;  %v303_v1 = vmax.f32 %v299_v60, %v722_v42  ;;  %v306_v4 = vmax.f32 %v302_v0, %v709_v35 }
  0x1b   : > { %v147_v21 = vmax.f32 %v671_v17, %v668_v15 }
  0x1c   : > { %v148_v32 = vmax.f32 %v693_v28, %v687_v26  ;;  %v307_v5 = vmax.f32 %v303_v1, %v730_v46  ;;  %v310_v14 = vmax.f32 %v306_v4, %v717_v39 }
  0x1d   : > { %v152_v25 = vmax.f32 %v147_v21, %v675_v19 }
  0x1e   : > { %v153_v36 = vmax.f32 %v148_v32, %v697_v30  ;;  %v311_v16 = vmax.f32 %v307_v5, %v738_v50 }
  0x1f   : > { %v157_v29 = vmax.f32 %v152_v25, %v683_v23 }
  0x20   : > { %v158_v40 = vmax.f32 %v153_v36, %v706_v34 }
  0x21   : > { %v162_v33 = vmax.f32 %v157_v29, %v690_v27 }
  0x22   : > { %v163_v44 = vmax.f32 %v158_v40, %v714_v38 }
  0x23   : > { %v167_v37 = vmax.f32 %v162_v33, %v700_v31 }
  0x24   : > { %v168_v48 = vmax.f32 %v163_v44, %v722_v42  ;;  %v314_v44 = vmax.f32 %v310_v14, %v725_v43 }
  0x25   : > { %v172_v41 = vmax.f32 %v167_v37, %v709_v35 }
  0x26   : > { %v173_v52 = vmax.f32 %v168_v48, %v730_v46 }
  0x27   : > { %v177_v45 = vmax.f32 %v172_v41, %v717_v39 }
  0x28   : > { %v178_v55 = vmax.f32 %v173_v52, %v738_v50 }
  0x29   : > { %v182_v49 = vmax.f32 %v177_v45, %v725_v43  ;;  %v315_v45 = vmax.f32 %v311_v16, %v746_v54  ;;  %v384_v16 = vmax.f32 %v680_v22, %v687_v26 }
  0x2a   : > { %v183_v58 = vmax.f32 %v178_v55, %v746_v54 }
  0x2b   : > { %v187_v53 = vmax.f32 %v182_v49, %v733_v47  ;;  %v318_v49 = vmax.f32 %v314_v44, %v733_v47  ;;  %v319_v52 = vmax.f32 %v315_v45, %v751_v57 }
  0x2c   : > { %v188_v62 = vmax.f32 %v183_v58, %v751_v57 }
  0x2d   : > { %v192_v56 = vmax.f32 %v187_v53, %v741_v51  ;;  %v322_v59 = vmax.f32 %v318_v49, %v741_v51  ;;  %v323_v60 = vmax.f32 %v319_v52, %v760_v61 }
  0x2e   : > { %v193_v63 = vmax.f32 %v188_v62, %v760_v61 }
  0x2f   : > { %195 = vst.msk [vmem:[#allocation2] sm:$0xff] %vm194_vm0, %v192_v56 }
  0x30   : > { %196 = vst.msk [vmem:[#allocation2 + $0x8] sm:$0xff] %vm194_vm0, %v193_v63 }
  0x36   : > { %v197_v2 = vld [vmem:[#allocation2] ss:$16 sm:$0x1]  ;;  %v199_v3 = vld [vmem:[#allocation2 + $0x1] ss:$16 sm:$0x1] }
  0x37   : > { %v202_v6 = vld [vmem:[#allocation2 + $0x2] ss:$16 sm:$0x1]  ;;  %v205_v7 = vld [vmem:[#allocation2 + $0x3] ss:$16 sm:$0x1] }
  0x38   : > { %v208_v8 = vld [vmem:[#allocation2 + $0x4] ss:$16 sm:$0x1]  ;;  %v211_v9 = vld [vmem:[#allocation2 + $0x5] ss:$16 sm:$0x1] }
  0x39   : > { %v206_v11 = vmax.f32 %v208_v8, %v205_v7  ;;  %v214_v12 = vld [vmem:[#allocation2 + $0x6] ss:$16 sm:$0x1]  ;;  %v217_v13 = vld [vmem:[#allocation2 + $0x7] ss:$16 sm:$0x1] }
  0x3a   : > { %275 = vst.msk [vmem:[#allocation2] sm:$0xff] %vm194_vm0, %v152_v25  ;;  %v220_v20 = vld [vmem:[#allocation2 + $0x8] ss:$16 sm:$0x1] }
  0x3b   : > { %v209_v18 = vmax.f32 %v206_v11, %v211_v9  ;;  %v223_v21 = vld [vmem:[#allocation2 + $0x9] ss:$16 sm:$0x1]  ;;  %v226_v24 = vld [vmem:[#allocation2 + $0xa] ss:$16 sm:$0x1]  ;;  %v383_v11 = vmax.f32 %v663_v10, %v668_v15 }
  0x3c   : > { %v229_v29 = vld [vmem:[#allocation2 + $0xb] ss:$16 sm:$0x1]  ;;  %v232_v33 = vld [vmem:[#allocation2 + $0xc] ss:$16 sm:$0x1] }
  0x3d   : > { %v212_v32 = vmax.f32 %v209_v18, %v214_v12  ;;  %v235_v37 = vld [vmem:[#allocation2 + $0xd] ss:$16 sm:$0x1]  ;;  %v238_v40 = vld [vmem:[#allocation2 + $0xe] ss:$16 sm:$0x1]  ;;  %v200_v12 = vmax.f32 %v197_v2, %v199_v3 }
  0x3e   : > { %v241_v41 = vld [vmem:[#allocation2 + $0xf] ss:$16 sm:$0x1] }
  0x3f   : > { %v215_v48 = vmax.f32 %v212_v32, %v217_v13  ;;  %276 = vst.msk [vmem:[#allocation2 + $0x8] sm:$0xff] %vm194_vm0, %v153_v36  ;;  %v388_v32 = vmax.f32 %v384_v16, %v697_v30 }
  0x41   : > { %v218_v25 = vmax.f32 %v215_v48, %v220_v20 }
  0x43   : > { %v221_v53 = vmax.f32 %v218_v25, %v223_v21  ;;  %v387_v21 = vmax.f32 %v383_v11, %v675_v19  ;;  %v419_v25 = vmax.f32 %v700_v31, %v709_v35 }
  0x45   : > { %v224_v55 = vmax.f32 %v221_v53, %v226_v24 }
  0x46   : > { %v277_v56 = vld [vmem:[#allocation2] ss:$8 sm:$0x3]  ;;  %v278_v58 = vld [vmem:[#allocation2 + $0x1] ss:$8 sm:$0x3] }
  0x47   : > { %v227_v62 = vmax.f32 %v224_v55, %v229_v29  ;;  %v280_v63 = vld [vmem:[#allocation2 + $0x2] ss:$8 sm:$0x3]  ;;  %v282_v0 = vld [vmem:[#allocation2 + $0x3] ss:$8 sm:$0x3]  ;;  %v279_v1 = vmax.f32 %v277_v56, %v278_v58  ;;  %v423_v55 = vmax.f32 %v419_v25, %v717_v39 }
  0x48   : > { %v284_v4 = vld [vmem:[#allocation2 + $0x4] ss:$8 sm:$0x3]  ;;  %v286_v5 = vld [vmem:[#allocation2 + $0x5] ss:$8 sm:$0x3] }
  0x49   : > { %v230_v36 = vmax.f32 %v227_v62, %v232_v33  ;;  %v288_v7 = vld [vmem:[#allocation2 + $0x6] ss:$8 sm:$0x3]  ;;  %v290_v8 = vld [vmem:[#allocation2 + $0x7] ss:$8 sm:$0x3]  ;;  %v281_v9 = vmax.f32 %v279_v1, %v280_v63  ;;  %v203_v33 = vmax.f32 %v200_v12, %v202_v6  ;;  %v391_v6 = vmax.f32 %v387_v21, %v683_v23 }
  0x4a   : > { %324 = vst.msk [vmem:[#allocation2] sm:$0xff] %vm194_vm0, %v322_v59  ;;  %325 = vst.msk [vmem:[#allocation2 + $0x8] sm:$0xff] %vm194_vm0, %v323_v60  ;;  %v420_v23 = vmax.f32 %v722_v42, %v730_v46 }
  0x4b   : > { %v233_v13 = vmax.f32 %v230_v36, %v235_v37  ;;  %v283_v14 = vmax.f32 %v281_v9, %v282_v0 }
  0x4d   : > { %v236_v18 = vmax.f32 %v233_v13, %v238_v40  ;;  %v285_v20 = vmax.f32 %v283_v14, %v284_v4  ;;  %v392_v40 = vmax.f32 %v388_v32, %v706_v34  ;;  %v395_v34 = vmax.f32 %v391_v6, %v690_v27 }
  0x4e   : > { %v427_v27 = vmax.f32 %v423_v55, %v725_v43 }
  0x4f   : > { %v239_v24 = vmax.f32 %v236_v18, %v241_v41  ;;  %v287_v29 = vmax.f32 %v285_v20, %v286_v5  ;;  %v396_v52 = vmax.f32 %v392_v40, %v714_v38 }
  0x51   : > { %v326_v44 = vld [vmem:[#allocation2] ss:$8 sm:$0x3]  ;;  %v327_v10 = vld [vmem:[#allocation2 + $0x1] ss:$8 sm:$0x3]  ;;  %v289_v15 = vmax.f32 %v287_v29, %v288_v7  ;;  %v242_v2 = vmax.f32 %v239_v24, %v203_v33  ;;  %v400_v58 = vmax.f32 %v396_v52, %v722_v42  ;;  %v431_v42 = vmax.f32 %v427_v27, %v733_v47 }
  0x52   : > { %v329_v3 = vld [vmem:[#allocation2 + $0x2] ss:$8 sm:$0x3]  ;;  %v331_v37 = vld [vmem:[#allocation2 + $0x3] ss:$8 sm:$0x3]  ;;  %v328_v19 = vmax.f32 %v326_v44, %v327_v10 }
  0x53   : > { %v333_v22 = vld [vmem:[#allocation2 + $0x4] ss:$8 sm:$0x3]  ;;  %v335_v26 = vld [vmem:[#allocation2 + $0x5] ss:$8 sm:$0x3]  ;;  %v291_v30 = vmax.f32 %v289_v15, %v290_v8 }
  0x54   : > { %244 = vst.msk [vmem:[%s791_s15] sm:$0x1] %vm243_vm2, %v242_v2  ;;  %v337_v41 = vld [vmem:[#allocation2 + $0x6] ss:$8 sm:$0x3]  ;;  %v330_v48 = vmax.f32 %v328_v19, %v329_v3 }
  0x55   : > { %v339_v45 = vld [vmem:[#allocation2 + $0x7] ss:$8 sm:$0x3]  ;;  %293 = vst.msk [vmem:[%s791_s15 + $0x1] sm:$0x3] %vm292_vm1, %v291_v30 }
  0x56   : > { %364 = vst.msk [vmem:[#allocation2] sm:$0xff] %vm194_vm0, %v671_v17  ;;  %365 = vst.msk [vmem:[#allocation2 + $0x8] sm:$0xff] %vm194_vm0, %v693_v28  ;;  %v332_v49 = vmax.f32 %v330_v48, %v331_v37  ;;  %v424_v17 = vmax.f32 %v420_v23, %v738_v50  ;;  %v399_v28 = vmax.f32 %v395_v34, %v700_v31 }
  0x58   : > { %v334_v53 = vmax.f32 %v332_v49, %v333_v22  ;;  %v428_v38 = vmax.f32 %v424_v17, %v746_v54  ;;  %v435_v54 = vmax.f32 %v431_v42, %v741_v51 }
  0x5a   : > { %v336_v56 = vmax.f32 %v334_v53, %v335_v26  ;;  %v432_v50 = vmax.f32 %v428_v38, %v751_v57 }
  0x5c   : > { %v338_v60 = vmax.f32 %v336_v56, %v337_v41  ;;  %v436_v5 = vmax.f32 %v432_v50, %v760_v61 }
  0x5d   : > { %v366_v35 = vld [vmem:[#allocation2] ss:$5 sm:$0x7]  ;;  %v367_v59 = vld [vmem:[#allocation2 + $0x1] ss:$5 sm:$0x7] }
  0x5e   : > { %v369_v46 = vld [vmem:[#allocation2 + $0x2] ss:$5 sm:$0x7]  ;;  %v371_v62 = vld [vmem:[#allocation2 + $0x3] ss:$5 sm:$0x7]  ;;  %v368_v63 = vmax.f32 %v366_v35, %v367_v59  ;;  %v340_v1 = vmax.f32 %v338_v60, %v339_v45 }
  0x5f   : > { %v373_v0 = vld [vmem:[#allocation2 + $0x4] ss:$5 sm:$0x7]  ;;  %v375_v39 = vld [vmem:[#allocation2 + $0x5] ss:$5 sm:$0x7] }
  0x60   : > { %401 = vst.msk [vmem:[#allocation2] sm:$0xff] %vm194_vm0, %v399_v28  ;;  %402 = vst.msk [vmem:[#allocation2 + $0x8] sm:$0xff] %vm194_vm0, %v400_v58  ;;  %v370_v31 = vmax.f32 %v368_v63, %v369_v46 }
  0x61   : > { %341 = vst.msk [vmem:[%s791_s15 + $0x3] sm:$0x3] %vm292_vm1, %v340_v1 }
  0x62   : > { %v372_v4 = vmax.f32 %v370_v31, %v371_v62 }
  0x64   : > { %v374_v43 = vmax.f32 %v372_v4, %v373_v0 }
  0x66   : > { %v376_v36 = vmax.f32 %v374_v43, %v375_v39 }
  0x67   : > { %v403_v7 = vld [vmem:[#allocation2] ss:$5 sm:$0x7]  ;;  %v404_v8 = vld [vmem:[#allocation2 + $0x1] ss:$5 sm:$0x7] }
  0x68   : > { %v406_v9 = vld [vmem:[#allocation2 + $0x2] ss:$5 sm:$0x7]  ;;  %v408_v11 = vld [vmem:[#allocation2 + $0x3] ss:$5 sm:$0x7]  ;;  %v405_v12 = vmax.f32 %v403_v7, %v404_v8 }
  0x69   : > { %378 = vst.msk [vmem:[%s791_s15 + $0x5] sm:$0x7] %vm377_vm3, %v376_v36  ;;  %v410_v13 = vld [vmem:[#allocation2 + $0x4] ss:$5 sm:$0x7] }
  0x6a   : > { %v412_v47 = vld [vmem:[#allocation2 + $0x5] ss:$5 sm:$0x7]  ;;  %v407_v57 = vmax.f32 %v405_v12, %v406_v9 }
  0x6b   : > { %437 = vst.msk [vmem:[#allocation2] sm:$0xff] %vm194_vm0, %v435_v54  ;;  %438 = vst.msk [vmem:[#allocation2 + $0x8] sm:$0xff] %vm194_vm0, %v436_v5 }
  0x6c   : > { %v409_v51 = vmax.f32 %v407_v57, %v408_v11 }
  0x6e   : > { %v411_v14 = vmax.f32 %v409_v51, %v410_v13 }
  0x70   : > { %v413_v61 = vmax.f32 %v411_v14, %v412_v47 }
  0x72   : > { %v439_v16 = vld [vmem:[#allocation2] ss:$5 sm:$0x7]  ;;  %v440_v18 = vld [vmem:[#allocation2 + $0x1] ss:$5 sm:$0x7] }
  0x73   : > { %414 = vst.msk [vmem:[%s791_s15 + $0x8] sm:$0x7] %vm377_vm3, %v413_v61  ;;  %v441_v20 = vmax.f32 %v439_v16, %v440_v18  ;;  %v442_v21 = vld [vmem:[#allocation2 + $0x2] ss:$5 sm:$0x7] }
  0x74   : > { %v444_v29 = vld [vmem:[#allocation2 + $0x3] ss:$5 sm:$0x7]  ;;  %v446_v33 = vld [vmem:[#allocation2 + $0x4] ss:$5 sm:$0x7] }
  0x75   : > { %v443_v24 = vmax.f32 %v441_v20, %v442_v21  ;;  %v448_v10 = vld [vmem:[#allocation2 + $0x5] ss:$5 sm:$0x7] }
  0x77   : > { %v445_v32 = vmax.f32 %v443_v24, %v444_v29 }
  0x79   : > { %v447_v44 = vmax.f32 %v445_v32, %v446_v33 }
  0x7b   : > { %v449_v15 = vmax.f32 %v447_v44, %v448_v10 }
  0x7d   : > { %450 = vst.msk [vmem:[%s791_s15 + $0xb] sm:$0x7] %vm377_vm3, %v449_v15 }
  0x7e PF: > { %s11_s6 = sadd.s32 1, %s627_s6  }
  0x7f   : > { %p8_p4 = scmp.ge.s32.totalorder %s11_s6, 4  }
  0x81   :  { %10 = sbr.rel (!%p8_p4) target bundleno = 1 (0x1), region = 84 }

</bundles_post_ra>
